<compile_context>
chip_gen: v5e
topology: v5e:2x2
jax: 0.10.0
libtpu: 0.0.40
codegen_flags: <defaults>
</compile_context>

<pallas_src>
import numpy as np
import jax
import jax.numpy as jnp
from jax.experimental import pallas as pl
from jax.experimental.pallas import tpu as pltpu


# ---------------------------------------------------------------------------
# Hardware-aware configuration
# ---------------------------------------------------------------------------
def _tpu_vmem_capacity():
    try:
        return int(pltpu.get_tpu_info().vmem_capacity_bytes)
    except Exception:
        return 64 * 1024 * 1024          # conservative default (v7x per-TC VMEM)


def _num_tensorcores():
    try:
        info = pltpu.get_tpu_info()
        for attr in ("num_cores", "core_count", "num_tensorcores", "tensorcore_count"):
            v = getattr(info, attr, None)
            if v:
                return int(v)
    except Exception:
        pass
    return 1


_VMEM_LIMIT = (_tpu_vmem_capacity() * 3) // 4   # headroom for Mosaic scratch/pipeline
_N_CORES = _num_tensorcores()

_SINGLE_BUFFER_OK = [True]


def _maybe_single_buffered(run):
    """Try single-buffered (Buffered(1)) constant blocks; fall back to the
    default double-buffering if this JAX/Mosaic build rejects it."""
    if _SINGLE_BUFFER_OK[0]:
        try:
            return run(True)
        except Exception:
            _SINGLE_BUFFER_OK[0] = False
    return run(False)


def _const_spec(shape, index_map, single_buffer):
    if single_buffer:
        return pl.BlockSpec(shape, index_map, pipeline_mode=pl.Buffered(1))
    return pl.BlockSpec(shape, index_map)


# ---------------------------------------------------------------------------
# Tiling helpers
# ---------------------------------------------------------------------------
def _round_up(x, m):
    return ((x + m - 1) // m) * m


def _pick_row_tile(m, cap=512):
    """Fixed large row tile; ragged last block is handled by Pallas masking."""
    return m if m <= cap else cap


def _pick_batch_tile(b, n_cores):
    # Split the batch grid axis only when there are >=2 TensorCores (v7x
    # megacore) and the split keeps 8-sublane alignment; on single-TC chips
    # (v5e/v6e) the grid is a serial loop so splitting only hurts MXU occupancy.
    if n_cores >= 2 and b % 16 == 0:
        return b // 2
    return b


def _pick_time_chunk(t, tb, hp, elem_bytes, stream_bufs, n_weight_mats,
                     vmem_limit, cap=128):
    """Largest divisor-of-T time chunk whose streamed slabs fit the VMEM budget."""
    resident = 2 * n_weight_mats * hp * 3 * hp * elem_bytes   # weights (worst case 2-buf)
    resident += 6 * tb * hp * 4                               # carry / final-h / biases
    budget = max(vmem_limit - resident - (4 << 20), 1 << 20)
    per_step = stream_bufs * tb * 3 * hp * elem_bytes
    tc_cap = int(min(max(budget // max(per_step, 1), 1), cap, t))
    for tc in range(tc_cap, 0, -1):
        if t % tc == 0:
            return tc
    return 1


# ---------------------------------------------------------------------------
# Weight / bias preparation (gate blocks padded to 128-lane multiples)
# ---------------------------------------------------------------------------
def _pad_gate_cols(w_t, h, hp):
    """(K, 3H) -> (K, 3Hp): gate g lands at columns [g*hp, g*hp + h)."""
    if hp == h:
        return w_t
    k = w_t.shape[0]
    out = jnp.zeros((k, 3 * hp), w_t.dtype)
    for g in range(3):
        out = out.at[:, g * hp: g * hp + h].set(w_t[:, g * h:(g + 1) * h])
    return out


def _pad_rows(w, hp):
    """(H, N) -> (Hp, N) with zero rows appended."""
    h, n = w.shape
    if hp == h:
        return w
    return jnp.concatenate([w, jnp.zeros((hp - h, n), w.dtype)], axis=0)


def _fold_biases(b_ih, b_hh, h, hp):
    """Pre-sum b_ih + b_hh for the r/z gates (n gate stays split because r
    multiplies only the hidden part of n), laid out in lane-padded blocks."""
    b_gi = jnp.concatenate([b_ih[: 2 * h] + b_hh[: 2 * h], b_ih[2 * h:]])
    b_gi = _pad_gate_cols(b_gi.reshape(1, 3 * h).astype(jnp.float32), h, hp)
    b_hn = b_hh[2 * h:].reshape(1, h).astype(jnp.float32)
    if hp != h:
        b_hn = jnp.concatenate([b_hn, jnp.zeros((1, hp - h), jnp.float32)], axis=1)
    return b_gi, b_hn


# ---------------------------------------------------------------------------
# Kernel 1: batched input projection   gi = X @ W_ih^T + (folded bias)
# ---------------------------------------------------------------------------
def _proj_kernel(x_ref, w_ref, b_ref, o_ref):
    acc = jnp.dot(x_ref[...], w_ref[...], preferred_element_type=jnp.float32)
    o_ref[...] = (acc + b_ref[...]).astype(o_ref.dtype)


def _input_projection(x2d, w_t, b_gi, out_dtype):
    """(M, K) @ (K, 3Hp) + b -> (M, 3Hp) in `out_dtype`, one MXU GEMM."""
    m, k = x2d.shape
    n = w_t.shape[1]
    rt = _pick_row_tile(m)

    def run(single_buffer):
        return pl.pallas_call(
            _proj_kernel,
            out_shape=jax.ShapeDtypeStruct((m, n), out_dtype),
            grid_spec=pltpu.PrefetchScalarGridSpec(
                num_scalar_prefetch=0,
                grid=(pl.cdiv(m, rt),),
                in_specs=[
                    pl.BlockSpec((rt, k), lambda i: (i, 0)),
                    _const_spec((k, n), lambda i: (0, 0), single_buffer),
                    _const_spec((1, n), lambda i: (0, 0), single_buffer),
                ],
                out_specs=pl.BlockSpec((rt, n), lambda i: (i, 0)),
            ),
            compiler_params=pltpu.CompilerParams(
                dimension_semantics=("parallel",),
                vmem_limit_bytes=_VMEM_LIMIT,
            ),
        )(x2d, w_t, b_gi)

    return _maybe_single_buffered(run)


# ---------------------------------------------------------------------------
# Kernel 2: layer-0 GRU recurrence fused with layer-1's input projection
# ---------------------------------------------------------------------------
def _gru_layer0_fused_kernel(gi0_ref, whh_ref, bhn_ref, wih1_ref, b1gi_ref,
                             gi1_ref, hfin_ref, h_scr):
    c = pl.program_id(1)                       # time-chunk index (inner axis)
    tc = gi0_ref.shape[0]
    tb, hp = h_scr.shape
    cdtype = whh_ref.dtype                     # MXU compute dtype (bf16 or f32)

    @pl.when(c == 0)
    def _init():
        h_scr[...] = jnp.zeros_like(h_scr)

    whh = whh_ref[...]                                        # (Hp, 3Hp) resident
    wih1 = wih1_ref[...]                                      # (Hp, 3Hp) resident
    bhn = jnp.broadcast_to(bhn_ref[...], (tb, hp))            # hoisted broadcasts
    b1gi = jnp.broadcast_to(b1gi_ref[...], (tb, 3 * hp))

    def step(j, h):
        gi = gi0_ref[j].astype(jnp.float32)                   # (TB, 3Hp)
        gh = jnp.dot(h.astype(cdtype), whh,
                     preferred_element_type=jnp.float32)      # (TB, 3Hp)
        r = jax.nn.sigmoid(gi[:, :hp] + gh[:, :hp])
        z = jax.nn.sigmoid(gi[:, hp:2 * hp] + gh[:, hp:2 * hp])
        n = jnp.tanh(gi[:, 2 * hp:] + r * (gh[:, 2 * hp:] + bhn))
        h_new = (1.0 - z) * n + z * h
        # Fused layer-1 input projection: independent of the h-chain, so the
        # MXU can overlap it with the next step's dependent matmul.
        g1 = jnp.dot(h_new.astype(cdtype), wih1,
                     preferred_element_type=jnp.float32) + b1gi
        gi1_ref[j] = g1.astype(gi1_ref.dtype)
        return h_new

    h_scr[...] = jax.lax.fori_loop(0, tc, step, h_scr[...],
                                   unroll=True if tc <= 32 else 8)

    @pl.when(c == pl.num_programs(1) - 1)
    def _final():
        hfin_ref[...] = h_scr[...]


def _gru_layer0_fused(gi0_seq, whh_t, b_hn, wih1_t, b1_gi, *, out_dtype):
    t, b, h3p = gi0_seq.shape
    hp = h3p // 3
    tb = _pick_batch_tile(b, _N_CORES)
    elem = jnp.dtype(out_dtype).itemsize
    tc = _pick_time_chunk(t, tb, hp, elem, stream_bufs=4, n_weight_mats=2,
                          vmem_limit=_VMEM_LIMIT)

    def run(single_buffer):
        return pl.pallas_call(
            _gru_layer0_fused_kernel,
            out_shape=(jax.ShapeDtypeStruct((t, b, h3p), out_dtype),
                       jax.ShapeDtypeStruct((b, hp), jnp.float32)),
            grid_spec=pltpu.PrefetchScalarGridSpec(
                num_scalar_prefetch=0,
                grid=(b // tb, t // tc),
                in_specs=[
                    pl.BlockSpec((tc, tb, h3p), lambda bi, ci: (ci, bi, 0)),
                    _const_spec((hp, h3p), lambda bi, ci: (0, 0), single_buffer),
                    _const_spec((1, hp), lambda bi, ci: (0, 0), single_buffer),
                    _const_spec((hp, h3p), lambda bi, ci: (0, 0), single_buffer),
                    _const_spec((1, h3p), lambda bi, ci: (0, 0), single_buffer),
                ],
                out_specs=(
                    pl.BlockSpec((tc, tb, h3p), lambda bi, ci: (ci, bi, 0)),
                    pl.BlockSpec((tb, hp), lambda bi, ci: (bi, 0)),
                ),
                scratch_shapes=[pltpu.VMEM((tb, hp), jnp.float32)],   # h carry
            ),
            compiler_params=pltpu.CompilerParams(
                dimension_semantics=("parallel", "arbitrary"),
                vmem_limit_bytes=_VMEM_LIMIT,
            ),
        )(gi0_seq, whh_t, b_hn, wih1_t, b1_gi)

    return _maybe_single_buffered(run)


# ---------------------------------------------------------------------------
# Kernel 3: layer-1 GRU recurrence, final-hidden-only output
# ---------------------------------------------------------------------------
def _gru_layer_final_kernel(gi_ref, whh_ref, bhn_ref, hfin_ref, h_scr):
    c = pl.program_id(1)
    tc = gi_ref.shape[0]
    tb, hp = h_scr.shape
    cdtype = whh_ref.dtype

    @pl.when(c == 0)
    def _init():
        h_scr[...] = jnp.zeros_like(h_scr)

    whh = whh_ref[...]
    bhn = jnp.broadcast_to(bhn_ref[...], (tb, hp))

    def step(j, h):
        gi = gi_ref[j].astype(jnp.float32)
        gh = jnp.dot(h.astype(cdtype), whh, preferred_element_type=jnp.float32)
        r = jax.nn.sigmoid(gi[:, :hp] + gh[:, :hp])
        z = jax.nn.sigmoid(gi[:, hp:2 * hp] + gh[:, hp:2 * hp])
        n = jnp.tanh(gi[:, 2 * hp:] + r * (gh[:, 2 * hp:] + bhn))
        return (1.0 - z) * n + z * h

    h_scr[...] = jax.lax.fori_loop(0, tc, step, h_scr[...],
                                   unroll=True if tc <= 32 else 8)

    @pl.when(c == pl.num_programs(1) - 1)
    def _final():
        hfin_ref[...] = h_scr[...]


def _gru_layer_final(gi_seq, whh_t, b_hn):
    t, b, h3p = gi_seq.shape
    hp = h3p // 3
    tb = _pick_batch_tile(b, _N_CORES)
    elem = jnp.dtype(gi_seq.dtype).itemsize
    tc = _pick_time_chunk(t, tb, hp, elem, stream_bufs=2, n_weight_mats=1,
                          vmem_limit=_VMEM_LIMIT)

    def run(single_buffer):
        return pl.pallas_call(
            _gru_layer_final_kernel,
            out_shape=jax.ShapeDtypeStruct((b, hp), jnp.float32),
            grid_spec=pltpu.PrefetchScalarGridSpec(
                num_scalar_prefetch=0,
                grid=(b // tb, t // tc),
                in_specs=[
                    pl.BlockSpec((tc, tb, h3p), lambda bi, ci: (ci, bi, 0)),
                    _const_spec((hp, h3p), lambda bi, ci: (0, 0), single_buffer),
                    _const_spec((1, hp), lambda bi, ci: (0, 0), single_buffer),
                ],
                out_specs=pl.BlockSpec((tb, hp), lambda bi, ci: (bi, 0)),
                scratch_shapes=[pltpu.VMEM((tb, hp), jnp.float32)],
            ),
            compiler_params=pltpu.CompilerParams(
                dimension_semantics=("parallel", "arbitrary"),
                vmem_limit_bytes=_VMEM_LIMIT,
            ),
        )(gi_seq, whh_t, b_hn)

    return _maybe_single_buffered(run)


# ---------------------------------------------------------------------------
# Encoder forward
# ---------------------------------------------------------------------------
def encoder_forward(src, params, *, compute_dtype=jnp.bfloat16):
    """src: (T, B, D) float32 -> final hidden state (2, B, H) float32."""
    t, b, d = src.shape
    h = params["w_hh_l0"].shape[1]
    hp = _round_up(h, 128)                    # lane-aligned gate width
    cd = compute_dtype

    # Pre-transposed, lane-padded, compute-dtype weights (x @ W_t, no in-kernel .T).
    wih0_t = _pad_gate_cols(params["w_ih_l0"].T, h, hp).astype(cd)              # (D, 3Hp)
    whh0_t = _pad_gate_cols(_pad_rows(params["w_hh_l0"].T, hp), h, hp).astype(cd)  # (Hp,3Hp)
    wih1_t = _pad_gate_cols(_pad_rows(params["w_ih_l1"].T, hp), h, hp).astype(cd)  # (Hp,3Hp)
    whh1_t = _pad_gate_cols(_pad_rows(params["w_hh_l1"].T, hp), h, hp).astype(cd)  # (Hp,3Hp)
    b0_gi, b0_hn = _fold_biases(params["b_ih_l0"], params["b_hh_l0"], h, hp)
    b1_gi, b1_hn = _fold_biases(params["b_ih_l1"], params["b_hh_l1"], h, hp)

    # Layer 0 gate inputs: one big (T*B, D) GEMM over all timesteps.
    gi0 = _input_projection(src.reshape(t * b, d).astype(cd), wih0_t, b0_gi,
                            out_dtype=cd)

    # Layer 0 recurrence, fused with layer 1's input projection — the layer-0
    # hidden sequence never touches HBM.  (Inter-layer dropout: eval-mode no-op.)
    gi1_seq, h0_fin = _gru_layer0_fused(gi0.reshape(t, b, 3 * hp), whh0_t, b0_hn,
                                        wih1_t, b1_gi, out_dtype=cd)

    # Layer 1 recurrence: final hidden only (its full sequence is never consumed).
    h1_fin = _gru_layer_final(gi1_seq, whh1_t, b1_hn)

    hidden = jnp.stack([h0_fin, h1_fin], axis=0)          # (2, B, Hp) f32
    return hidden[..., :h]                                # drop lane padding


# ---------------------------------------------------------------------------
# Pure-JAX reference (PyTorch nn.GRU eval semantics, 2 layers)
# ---------------------------------------------------------------------------
def encoder_reference(src, params):
    h = params["w_hh_l0"].shape[1]

    def cell(x, hs, wih, whh, bih, bhh):
        gi = x @ wih.T + bih
        gh = hs @ whh.T + bhh
        r = jax.nn.sigmoid(gi[:, :h] + gh[:, :h])
        z = jax.nn.sigmoid(gi[:, h:2 * h] + gh[:, h:2 * h])
        n = jnp.tanh(gi[:, 2 * h:] + r * gh[:, 2 * h:])
        return (1.0 - z) * n + z * hs

    b = src.shape[1]
    h0 = jnp.zeros((b, h), jnp.float32)
    h1 = jnp.zeros((b, h), jnp.float32)

    def step(carry, x_t):
        h0, h1 = carry
        h0 = cell(x_t, h0, params["w_ih_l0"], params["w_hh_l0"],
                  params["b_ih_l0"], params["b_hh_l0"])
        h1 = cell(h0, h1, params["w_ih_l1"], params["w_hh_l1"],
                  params["b_ih_l1"], params["b_hh_l1"])
        return (h0, h1), None

    (h0, h1), _ = jax.lax.scan(step, (h0, h1), src)
    return jnp.stack([h0, h1], axis=0)


def init_params(key, input_dim, hid_dim):
    k = 1.0 / np.sqrt(hid_dim)
    shapes = {
        "w_ih_l0": (3 * hid_dim, input_dim),
        "w_hh_l0": (3 * hid_dim, hid_dim),
        "b_ih_l0": (3 * hid_dim,),
        "b_hh_l0": (3 * hid_dim,),
        "w_ih_l1": (3 * hid_dim, hid_dim),
        "w_hh_l1": (3 * hid_dim, hid_dim),
        "b_ih_l1": (3 * hid_dim,),
        "b_hh_l1": (3 * hid_dim,),
    }
    params = {}
    for name, shape in shapes.items():
        key, sub = jax.random.split(key)
        params[name] = jax.random.uniform(sub, shape, jnp.float32, -k, k)
    return params


if __name__ == "__main__":
    T, B, D, H = 8, 2, 8, 32          # seq, batch, input_dim, hid_dim
    key = jax.random.PRNGKey(0)
    key, ksrc = jax.random.split(key)
    src = jax.random.normal(ksrc, (T, B, D), jnp.float32)
    params = init_params(key, D, H)

    ref = encoder_reference(src, params)

    # f32 compute path: must match PyTorch-semantics reference tightly.
    hid_f32 = jax.block_until_ready(
        encoder_forward(src, params, compute_dtype=jnp.float32))
    np.testing.assert_allclose(np.asarray(hid_f32), np.asarray(ref),
                               rtol=1e-5, atol=1e-5)
    assert hid_f32.shape == (2, B, H)

    # bf16-weights/streams, f32-accumulate path (performance config):
    # tolerance loosened per bf16 mantissa; carry stays f32.
    hid_bf16 = jax.block_until_ready(
        encoder_forward(src, params, compute_dtype=jnp.bfloat16))
    np.testing.assert_allclose(np.asarray(hid_bf16), np.asarray(ref),
                               rtol=3e-2, atol=3e-2)
    assert hid_bf16.shape == (2, B, H)

    print("KERNEL_OK")
</pallas_src>

<mosaic_0001>
module attributes {stable_mosaic.version = 11 : i64} {
  func.func @_proj_kernel(%arg0: i32, %arg1: memref<16x8xf32, #tpu.memory_space<vmem>>, %arg2: memref<8x384xf32, #tpu.memory_space<vmem>>, %arg3: memref<1x384xf32, #tpu.memory_space<vmem>>, %arg4: memref<16x384xf32, #tpu.memory_space<vmem>>) attributes {dimension_semantics = [#tpu.dimension_semantics<parallel>], iteration_bounds = array<i64: 1>, scalar_prefetch = 0 : i64, scratch_operands = 0 : i64, tpu.core_type = #tpu.core_type<tc>, window_params = [{transform_indices = @transform_0, window_bounds = array<i64: 16, 8>}, {pipeline_mode = #tpu.pipeline_mode<synchronous>, transform_indices = @transform_1, window_bounds = array<i64: 8, 384>}, {pipeline_mode = #tpu.pipeline_mode<synchronous>, transform_indices = @transform_2, window_bounds = array<i64: 1, 384>}, {transform_indices = @transform_3, window_bounds = array<i64: 16, 384>}]} {
    %c0 = arith.constant 0 : index
    %c0_0 = arith.constant 0 : index
    %0 = vector.load %arg1[%c0, %c0_0] : memref<16x8xf32, #tpu.memory_space<vmem>>, vector<16x8xf32>
    %c0_1 = arith.constant 0 : index
    %c0_2 = arith.constant 0 : index
    %1 = vector.load %arg2[%c0_1, %c0_2] : memref<8x384xf32, #tpu.memory_space<vmem>>, vector<8x384xf32>
    %cst = arith.constant dense<0.000000e+00> : vector<16x384xf32>
    %2 = tpu.matmul %0, %1, %cst {dimension_numbers = #tpu.dot_dimension_numbers<[1], [0], [0], [1], [0, 0, 1, 1], [], []>} : vector<16x8xf32>, vector<8x384xf32>, vector<16x384xf32> -> vector<16x384xf32>
    %c0_3 = arith.constant 0 : index
    %c0_4 = arith.constant 0 : index
    %3 = vector.load %arg3[%c0_3, %c0_4] : memref<1x384xf32, #tpu.memory_space<vmem>>, vector<1x384xf32>
    %4 = vector.broadcast %3 : vector<1x384xf32> to vector<16x384xf32>
    %5 = arith.addf %2, %4 : vector<16x384xf32>
    %c0_5 = arith.constant 0 : index
    %c0_6 = arith.constant 0 : index
    %6 = vector.load %arg4[%c0_5, %c0_6] : memref<16x384xf32, #tpu.memory_space<vmem>>, vector<16x384xf32>
    tpu.vector_store %arg4[%c0_5, %c0_6], %5 {strides = array<i32>} : memref<16x384xf32, #tpu.memory_space<vmem>>, vector<16x384xf32>,
    return
  }
  func.func @transform_0(%arg0: i32) -> (i32, i32) {
    %c0_i32 = arith.constant 0 : i32
    %c0_i32_0 = arith.constant 0 : i32
    return %arg0, %c0_i32 : i32, i32
  }
  func.func @transform_1(%arg0: i32) -> (i32, i32) {
    %c0_i32 = arith.constant 0 : i32
    %c0_i32_0 = arith.constant 0 : i32
    %c0_i32_1 = arith.constant 0 : i32
    return %c0_i32, %c0_i32_0 : i32, i32
  }
  func.func @transform_2(%arg0: i32) -> (i32, i32) {
    %c0_i32 = arith.constant 0 : i32
    %c0_i32_0 = arith.constant 0 : i32
    %c0_i32_1 = arith.constant 0 : i32
    return %c0_i32, %c0_i32_0 : i32, i32
  }
  func.func @transform_3(%arg0: i32) -> (i32, i32) {
    %c0_i32 = arith.constant 0 : i32
    %c0_i32_0 = arith.constant 0 : i32
    return %arg0, %c0_i32 : i32, i32
  }
}

module attributes {stable_mosaic.version = 11 : i64} {
  func.func @_proj_kernel(%arg0: i32, %arg1: memref<16x8xf32, #tpu.memory_space<vmem>>, %arg2: memref<8x384xf32, #tpu.memory_space<vmem>>, %arg3: memref<1x384xf32, #tpu.memory_space<vmem>>, %arg4: memref<16x384xf32, #tpu.memory_space<vmem>>) attributes {dimension_semantics = [#tpu.dimension_semantics<parallel>], iteration_bounds = array<i64: 1>, scalar_prefetch = 0 : i64, scratch_operands = 0 : i64, tpu.core_type = #tpu.core_type<tc>, window_params = [{transform_indices = @transform_0, window_bounds = array<i64: 16, 8>}, {pipeline_mode = #tpu.pipeline_mode<synchronous>, transform_indices = @transform_1, window_bounds = array<i64: 8, 384>}, {pipeline_mode = #tpu.pipeline_mode<synchronous>, transform_indices = @transform_2, window_bounds = array<i64: 1, 384>}, {transform_indices = @transform_3, window_bounds = array<i64: 16, 384>}]} {
    %c0 = arith.constant 0 : index
    %c0_0 = arith.constant 0 : index
    %0 = vector.load %arg1[%c0, %c0_0] : memref<16x8xf32, #tpu.memory_space<vmem>>, vector<16x8xf32>
    %c0_1 = arith.constant 0 : index
    %c0_2 = arith.constant 0 : index
    %1 = vector.load %arg2[%c0_1, %c0_2] : memref<8x384xf32, #tpu.memory_space<vmem>>, vector<8x384xf32>
    %cst = arith.constant dense<0.000000e+00> : vector<16x384xf32>
    %2 = tpu.matmul %0, %1, %cst {dimension_numbers = #tpu.dot_dimension_numbers<[1], [0], [0], [1], [0, 0, 1, 1], [], []>} : vector<16x8xf32>, vector<8x384xf32>, vector<16x384xf32> -> vector<16x384xf32>
    %c0_3 = arith.constant 0 : index
    %c0_4 = arith.constant 0 : index
    %3 = vector.load %arg3[%c0_3, %c0_4] : memref<1x384xf32, #tpu.memory_space<vmem>>, vector<1x384xf32>
    %4 = vector.broadcast %3 : vector<1x384xf32> to vector<16x384xf32>
    %5 = arith.addf %2, %4 : vector<16x384xf32>
    %c0_5 = arith.constant 0 : index
    %c0_6 = arith.constant 0 : index
    %6 = vector.load %arg4[%c0_5, %c0_6] : memref<16x384xf32, #tpu.memory_space<vmem>>, vector<16x384xf32>
    tpu.vector_store %arg4[%c0_5, %c0_6], %5 {strides = array<i32>} : memref<16x384xf32, #tpu.memory_space<vmem>>, vector<16x384xf32>,
    return
  }
  func.func @transform_0(%arg0: i32) -> (i32, i32) {
    %c0_i32 = arith.constant 0 : i32
    %c0_i32_0 = arith.constant 0 : i32
    return %arg0, %c0_i32 : i32, i32
  }
  func.func @transform_1(%arg0: i32) -> (i32, i32) {
    %c0_i32 = arith.constant 0 : i32
    %c0_i32_0 = arith.constant 0 : i32
    %c0_i32_1 = arith.constant 0 : i32
    return %c0_i32, %c0_i32_0 : i32, i32
  }
  func.func @transform_2(%arg0: i32) -> (i32, i32) {
    %c0_i32 = arith.constant 0 : i32
    %c0_i32_0 = arith.constant 0 : i32
    %c0_i32_1 = arith.constant 0 : i32
    return %c0_i32, %c0_i32_0 : i32, i32
  }
  func.func @transform_3(%arg0: i32) -> (i32, i32) {
    %c0_i32 = arith.constant 0 : i32
    %c0_i32_0 = arith.constant 0 : i32
    return %arg0, %c0_i32 : i32, i32
  }
}

</mosaic_0001>

<bundles_post_ra>
// kernel: tpu_custom_call.1
= control target key start
LH: loop header
LB: loop body
LE: loop exit
PB: predicated region body
PF: predicated region fallthrough
CT: control target
= control target key end

     0   :  { %8 = vsyncpa [#allocation3], 0  ;;  %s251_s0 = inlined_call_operand.vmem [shape: f32[16,8], index: 0, kind: input, shape index: {}]   ;;  %s252_s1 = inlined_call_operand.vmem [shape: f32[8,384], index: 1, kind: input, shape index: {}]   ;;  %s253_s2 = inlined_call_operand.hbm [shape: f32[1,384], index: 2, kind: input, shape index: {}]   ;;  %s254_s3 = inlined_call_operand.hbm [shape: f32[16,384], index: 3, kind: output, shape index: {}]  }
   0x1   :  { %9 = vsyncpa [#allocation4], 0  ;;  %s19_s14 = sshll.u32 %s253_s2, 4  ;;  %s206_s15 = smov [#allocation2]   ;;  %s20_s14 = int_to_ptr.hbm [resolvable:$true] %s19_s14 }
   0x2   :  { %s21_s16 = sshll.u32 %s206_s15, 4  ;;  %s22_s16 = int_to_ptr.vmem [resolvable:$true] %s21_s16 }
   0x3   :  { %24 = dma.hbm_to_vmem [thread:$0]  %s20_s14, 48, %s22_s16, [#allocation3]  }
   0x4   :  { %202 = dma.done.wait [#allocation3], 48  }
   0x5   :  { %203 = vsyncadd [#allocation3], 4294967248  ;;  %vm42_vm0 = vcmask 64512   ;;  %v33_v0 = vld [vmem:[%s252_s1 + $0x10] sm:$0xff]  ;;  %v29_v1 = vld [vmem:[%s251_s0] sm:$0xff]  ;;  %s130_s28 = sshll.u32 %s254_s3, 4  ;;  %s131_s28 = int_to_ptr.hbm [resolvable:$true] %s130_s28 }
   0x6   :  { %v32_v2 = vld [vmem:[%s252_s1 + $0x8] sm:$0xff]  ;;  %110 = vmatpush.msra.mxu2 %v33_v0  ;;  %v31_v3 = vld [vmem:[%s252_s1] sm:$0xff]  ;;  %s208_s29 = smov 384   ;;  %s209_s30 = smov 24  }
   0x7   :  { %87 = vmatpush.msra.mxu1 %v32_v2  ;;  %v30_v4 = vld [vmem:[%s251_s0 + $0x8] sm:$0xff]  ;;  %147 = vmatmul.msk.f32.vlgmr.msra.gmra.mxu2 %vm42_vm0, %v29_v1  ;;  %v34_v5 = vld [vmem:[#allocation2] sm:$0x7]  ;;  %s207_s0 = smov [#allocation5]  }
   0x8   :  { %145 = vmatmul.msk.f32.vlgmr.msra.gmra.mxu1 %vm42_vm0, %v29_v1  ;;  %149 = vmatpush.msra.mxu3 %v31_v3  ;;  %v37_v6 = vperm.slane %v34_v5, 1  ;;  %v36_v7 = vperm.slane %v34_v5, 0  ;;  %v38_v11 = vperm.slane %v34_v5, 2  ;;  %s128_s1 = sshll.u32 %s207_s0, 4  ;;  %s129_s1 = int_to_ptr.vmem [resolvable:$true] %s128_s1 }
   0x9   :  { %64 = vmatpush.msra.mxu0 %v31_v3  ;;  %144 = vmatmul.msk.f32.vlgmr.msra.gmra.mxu3 %vm42_vm0, %v30_v4 }
   0xa   :  { %143 = vmatmul.msk.f32.vlgmr.msra.gmra.mxu0 %vm42_vm0, %v29_v1 }
   0xf   :  { %148 = vmatmul.msk.f32.gmra.mxu2 %vm42_vm0, %v30_v4 }
  0x10   :  { %146 = vmatmul.msk.f32.gmra.mxu1 %vm42_vm0, %v30_v4 }
  0x85   :  { %v89_v8 = vpop.f32.mrf.mxu1 }
  0x86   :  { %v90_v9 = vadd.f32 %v89_v8, %v37_v6 }
  0x87   :  { %v66_v10 = vpop.f32.mrf.mxu0 }
  0x88   :  { %119 = vst [vmem:[#allocation5 + $0x8] sm:$0xff] %v90_v9  ;;  %v67_v12 = vadd.f32 %v66_v10, %v36_v7 }
  0x8a   :  { %118 = vst [vmem:[#allocation5] sm:$0xff] %v67_v12  ;;  %v112_v13 = vpop.f32.mrf.mxu2 }
  0x8b   :  { %v113_v14 = vadd.f32 %v112_v13, %v38_v11 }
  0x8c   :  { %v69_v15 = vpop.f32.mrf.mxu3 }
  0x8d   :  { %v92_v16 = vpop.f32.mrf.mxu1  ;;  %120 = vst [vmem:[#allocation5 + $0x10] sm:$0xff] %v113_v14  ;;  %v70_v17 = vadd.f32 %v69_v15, %v36_v7 }
  0x8e   :  { %v93_v18 = vadd.f32 %v92_v16, %v37_v6 }
  0x8f   :  { %121 = vst [vmem:[#allocation5 + $0x18] sm:$0xff] %v70_v17 }
  0x90   :  { %122 = vst [vmem:[#allocation5 + $0x20] sm:$0xff] %v93_v18 }
  0x92   :  { %v115_v19 = vpop.f32.mrf.mxu2 }
  0x93   :  { %v116_v20 = vadd.f32 %v115_v19, %v38_v11 }
  0x95   :  { %123 = vst [vmem:[#allocation5 + $0x28] sm:$0xff] %v116_v20 }
  0x96   :  { %136 = dma.vmem_to_hbm [thread:$0]  %s129_s1, 768, %s131_s28, [#allocation4], %s208_s29, %s208_s29, %s209_s30  }
  0x97   :  { %204 = dma.done.wait [#allocation4], 768  }
  0x98   :  { %205 = vsyncadd [#allocation4], 4294966528 }
  0x99   :  { %141 = vsyncpa [#allocation3], 1 }
  0x9a   :  { %142 = vsyncpa [#allocation4], 1 }

// kernel: tpu_custom_call.1
= control target key start
LH: loop header
LB: loop body
LE: loop exit
PB: predicated region body
PF: predicated region fallthrough
CT: control target
= control target key end

     0   :  { %8 = vsyncpa [#allocation3], 0  ;;  %s251_s0 = inlined_call_operand.vmem [shape: f32[16,8], index: 0, kind: input, shape index: {}]   ;;  %s252_s1 = inlined_call_operand.vmem [shape: f32[8,384], index: 1, kind: input, shape index: {}]   ;;  %s253_s2 = inlined_call_operand.hbm [shape: f32[1,384], index: 2, kind: input, shape index: {}]   ;;  %s254_s3 = inlined_call_operand.hbm [shape: f32[16,384], index: 3, kind: output, shape index: {}]  }
   0x1   :  { %9 = vsyncpa [#allocation4], 0  ;;  %s19_s14 = sshll.u32 %s253_s2, 4  ;;  %s206_s15 = smov [#allocation2]   ;;  %s20_s14 = int_to_ptr.hbm [resolvable:$true] %s19_s14 }
   0x2   :  { %s21_s16 = sshll.u32 %s206_s15, 4  ;;  %s22_s16 = int_to_ptr.vmem [resolvable:$true] %s21_s16 }
   0x3   :  { %24 = dma.hbm_to_vmem [thread:$0]  %s20_s14, 48, %s22_s16, [#allocation3]  }
   0x4   :  { %202 = dma.done.wait [#allocation3], 48  }
   0x5   :  { %203 = vsyncadd [#allocation3], 4294967248  ;;  %vm42_vm0 = vcmask 64512   ;;  %v33_v0 = vld [vmem:[%s252_s1 + $0x10] sm:$0xff]  ;;  %v29_v1 = vld [vmem:[%s251_s0] sm:$0xff]  ;;  %s130_s28 = sshll.u32 %s254_s3, 4  ;;  %s131_s28 = int_to_ptr.hbm [resolvable:$true] %s130_s28 }
   0x6   :  { %v32_v2 = vld [vmem:[%s252_s1 + $0x8] sm:$0xff]  ;;  %110 = vmatpush.msra.mxu2 %v33_v0  ;;  %v31_v3 = vld [vmem:[%s252_s1] sm:$0xff]  ;;  %s208_s29 = smov 384   ;;  %s209_s30 = smov 24  }
   0x7   :  { %87 = vmatpush.msra.mxu1 %v32_v2  ;;  %v30_v4 = vld [vmem:[%s251_s0 + $0x8] sm:$0xff]  ;;  %147 = vmatmul.msk.f32.vlgmr.msra.gmra.mxu2 %vm42_vm0, %v29_v1  ;;  %v34_v5 = vld [vmem:[#allocation2] sm:$0x7]  ;;  %s207_s0 = smov [#allocation5]  }
   0x8   :  { %145 = vmatmul.msk.f32.vlgmr.msra.gmra.mxu1 %vm42_vm0, %v29_v1  ;;  %149 = vmatpush.msra.mxu3 %v31_v3  ;;  %v37_v6 = vperm.slane %v34_v5, 1  ;;  %v36_v7 = vperm.slane %v34_v5, 0  ;;  %v38_v11 = vperm.slane %v34_v5, 2  ;;  %s128_s1 = sshll.u32 %s207_s0, 4  ;;  %s129_s1 = int_to_ptr.vmem [resolvable:$true] %s128_s1 }
   0x9   :  { %64 = vmatpush.msra.mxu0 %v31_v3  ;;  %144 = vmatmul.msk.f32.vlgmr.msra.gmra.mxu3 %vm42_vm0, %v30_v4 }
   0xa   :  { %143 = vmatmul.msk.f32.vlgmr.msra.gmra.mxu0 %vm42_vm0, %v29_v1 }
   0xf   :  { %148 = vmatmul.msk.f32.gmra.mxu2 %vm42_vm0, %v30_v4 }
  0x10   :  { %146 = vmatmul.msk.f32.gmra.mxu1 %vm42_vm0, %v30_v4 }
  0x85   :  { %v89_v8 = vpop.f32.mrf.mxu1 }
  0x86   :  { %v90_v9 = vadd.f32 %v89_v8, %v37_v6 }
  0x87   :  { %v66_v10 = vpop.f32.mrf.mxu0 }
  0x88   :  { %119 = vst [vmem:[#allocation5 + $0x8] sm:$0xff] %v90_v9  ;;  %v67_v12 = vadd.f32 %v66_v10, %v36_v7 }
  0x8a   :  { %118 = vst [vmem:[#allocation5] sm:$0xff] %v67_v12  ;;  %v112_v13 = vpop.f32.mrf.mxu2 }
  0x8b   :  { %v113_v14 = vadd.f32 %v112_v13, %v38_v11 }
  0x8c   :  { %v69_v15 = vpop.f32.mrf.mxu3 }
  0x8d   :  { %v92_v16 = vpop.f32.mrf.mxu1  ;;  %120 = vst [vmem:[#allocation5 + $0x10] sm:$0xff] %v113_v14  ;;  %v70_v17 = vadd.f32 %v69_v15, %v36_v7 }
  0x8e   :  { %v93_v18 = vadd.f32 %v92_v16, %v37_v6 }
  0x8f   :  { %121 = vst [vmem:[#allocation5 + $0x18] sm:$0xff] %v70_v17 }
  0x90   :  { %122 = vst [vmem:[#allocation5 + $0x20] sm:$0xff] %v93_v18 }
  0x92   :  { %v115_v19 = vpop.f32.mrf.mxu2 }
  0x93   :  { %v116_v20 = vadd.f32 %v115_v19, %v38_v11 }
  0x95   :  { %123 = vst [vmem:[#allocation5 + $0x28] sm:$0xff] %v116_v20 }
  0x96   :  { %136 = dma.vmem_to_hbm [thread:$0]  %s129_s1, 768, %s131_s28, [#allocation4], %s208_s29, %s208_s29, %s209_s30  }
  0x97   :  { %204 = dma.done.wait [#allocation4], 768  }
  0x98   :  { %205 = vsyncadd [#allocation4], 4294966528 }
  0x99   :  { %141 = vsyncpa [#allocation3], 1 }
  0x9a   :  { %142 = vsyncpa [#allocation4], 1 }

</bundles_post_ra>
